<compile_context>
chip_gen: v5e
topology: v5e:2x2
jax: 0.10.0
libtpu: 0.0.40
codegen_flags: <defaults>
</compile_context>

<pallas_src>
import math

import jax
import jax.numpy as jnp
import numpy as np
from jax import lax
from jax.experimental import pallas as pl
from jax.experimental.pallas import tpu as pltpu

# ---- small, deterministic config (mirrors the GPTConfig fields used) ----
B = 2                  # batch
T = 8                  # sequence length (== block_size)
C = 32                 # n_embd
N_HEAD = 4             # n_head
D_HEAD = C // N_HEAD   # head dim
SCALE = 1.0 / math.sqrt(D_HEAD)
NEG_INF = -1e30        # large finite negative: same softmax result, no inf arithmetic


def attn_kernel(x_ref, wqkv_ref, wproj_ref, bias_ref, o_ref):
    # x_ref:    (B*T, C)  bf16
    # wqkv_ref: (C, 3C)   bf16   columns = [Q | K | V], head-major inside each block
    # wproj_ref:(C, C)    bf16
    # bias_ref: (1, 4C)   f32    = [attn bias (3C) | proj bias (C)]
    # o_ref:    (B*T, C)  f32
    b_attn = bias_ref[:, : 3 * C]                     # (1, 3C)
    b_proj = bias_ref[:, 3 * C:]                      # (1, C)

    # ---- fused QKV projection: one MXU push, f32 accumulate ----
    qkv = jnp.dot(x_ref[...], wqkv_ref[...],
                  preferred_element_type=jnp.float32) + b_attn          # (B*T, 3C) f32
    qkv = qkv.reshape(B, T, 3 * C)                    # free leading-dim split

    q_all = qkv[:, :, 0 * C:1 * C]                    # (B, T, C)
    k_all = qkv[:, :, 1 * C:2 * C]
    v_all = qkv[:, :, 2 * C:3 * C]

    # Causal mask built once (hoisted out of the head loop).
    row = lax.broadcasted_iota(jnp.int32, (T, T), 0)
    col = lax.broadcasted_iota(jnp.int32, (T, T), 1)
    causal = (row >= col)[None]                       # (1, T, T)

    # ---- attention, batched over B, statically unrolled over heads ----
    y_heads = []
    for h in range(N_HEAD):
        sl = slice(h * D_HEAD, (h + 1) * D_HEAD)
        qh = q_all[:, :, sl].astype(jnp.bfloat16)     # (B, T, D)
        kh = k_all[:, :, sl].astype(jnp.bfloat16)
        vh = v_all[:, :, sl].astype(jnp.bfloat16)

        # Contract the head dim directly (no explicit k transpose).
        s = jnp.einsum("btd,bsd->bts", qh, kh,
                       preferred_element_type=jnp.float32) * SCALE      # (B, T, T) f32
        s = jnp.where(causal, s, NEG_INF)

        # Explicit softmax in f32; exact division (EUP not the bottleneck here).
        m = jnp.max(s, axis=-1, keepdims=True)
        e = jnp.exp(s - m)
        p = e / jnp.sum(e, axis=-1, keepdims=True)
        # attn_dropout is identity (dropout = 0.0).

        yh = jnp.einsum("bts,bsd->btd", p.astype(jnp.bfloat16), vh,
                        preferred_element_type=jnp.float32)             # (B, T, D) f32
        y_heads.append(yh)

    # Lane-axis concat -> column index h*D + d == torch's y.transpose(1,2).view(B,T,C).
    y = jnp.concatenate(y_heads, axis=-1)             # (B, T, C)
    y2 = y.reshape(B * T, C).astype(jnp.bfloat16)     # free leading-dim merge

    # ---- fused output projection: one MXU push ----
    out = jnp.dot(y2, wproj_ref[...],
                  preferred_element_type=jnp.float32) + b_proj          # (B*T, C) f32
    # resid_dropout is identity (dropout = 0.0).
    o_ref[...] = out.astype(o_ref.dtype)


@jax.jit
def causal_self_attention(x, wattn, battn, wproj, bproj):
    # Trace-time layout plumbing (what would be done once at weight-load time).
    x2 = x.reshape(B * T, C).astype(jnp.bfloat16)
    wqkv = wattn.astype(jnp.bfloat16)                 # (C, 3C), already head-major per block
    wo = wproj.astype(jnp.bfloat16)                   # (C, C)
    bias = jnp.concatenate([battn, bproj]).reshape(1, 4 * C).astype(jnp.float32)

    args = (x2, wqkv, wo, bias)

    flops = (2 * B * T * C * (3 * C)                  # fused qkv projection
             + B * N_HEAD * (2 * T * T * D_HEAD) * 2  # q@k^T and p@v
             + 2 * B * T * C * C)                     # fused output projection
    transcendentals = B * N_HEAD * T * T              # exp
    bytes_accessed = (sum(int(np.prod(a.shape)) * a.dtype.itemsize for a in args)
                      + B * T * C * 4)

    out = pl.pallas_call(
        attn_kernel,
        out_shape=jax.ShapeDtypeStruct((B * T, C), jnp.float32),
        in_specs=[pl.BlockSpec(memory_space=pltpu.MemorySpace.VMEM)
                  for _ in range(len(args))],
        out_specs=pl.BlockSpec(memory_space=pltpu.MemorySpace.VMEM),
        cost_estimate=pl.CostEstimate(flops=flops,
                                      transcendentals=transcendentals,
                                      bytes_accessed=bytes_accessed),
    )(*args)
    return out.reshape(B, T, C).astype(x.dtype)       # free reshape in the wrapper


def make_params(key):
    k1, k2, k3, k4 = jax.random.split(key, 4)
    std = 0.02
    wattn = jax.random.normal(k1, (C, 3 * C), jnp.float32) * std   # x @ wattn + battn
    battn = jax.random.normal(k2, (3 * C,), jnp.float32) * std
    wproj = jax.random.normal(k3, (C, C), jnp.float32) * std       # y @ wproj + bproj
    bproj = jax.random.normal(k4, (C,), jnp.float32) * std
    return wattn, battn, wproj, bproj


def reference_attention(x, wattn, battn, wproj, bproj):
    """Pure-JAX (f32) mirror of the PyTorch forward (dropout=0) for a sanity check."""
    qkv = x @ wattn + battn
    q, k, v = jnp.split(qkv, 3, axis=-1)

    def heads(t):
        return t.reshape(B, T, N_HEAD, D_HEAD).transpose(0, 2, 1, 3)

    q, k, v = heads(q), heads(k), heads(v)
    att = jnp.einsum("bhtd,bhsd->bhts", q, k) * SCALE
    mask = jnp.tril(jnp.ones((T, T), bool))
    att = jnp.where(mask, att, -jnp.inf)
    att = jax.nn.softmax(att, axis=-1)
    y = jnp.einsum("bhts,bhsd->bhtd", att, v)
    y = y.transpose(0, 2, 1, 3).reshape(B, T, C)
    return y @ wproj + bproj


if __name__ == "__main__":
    key = jax.random.PRNGKey(0)
    kx, kp = jax.random.split(key)
    x = jax.random.normal(kx, (B, T, C), jnp.float32)
    params = make_params(kp)

    out = jax.block_until_ready(causal_self_attention(x, *params))
    ref = jax.block_until_ready(reference_attention(x, *params))

    # Tolerance covers the bf16 MXU operands (f32 accumulation, f32 softmax).
    np.testing.assert_allclose(np.asarray(out), np.asarray(ref), rtol=2e-2, atol=2e-3)

    print("KERNEL_OK")
</pallas_src>

<mosaic_0001>
module attributes {stable_mosaic.version = 11 : i64} {
  func.func @attn_kernel(%arg0: memref<16x32xbf16, #tpu.memory_space<vmem>>, %arg1: memref<32x96xbf16, #tpu.memory_space<vmem>>, %arg2: memref<32x32xbf16, #tpu.memory_space<vmem>>, %arg3: memref<1x128xf32, #tpu.memory_space<vmem>>, %arg4: memref<16x32xf32, #tpu.memory_space<vmem>>) attributes {dimension_semantics = [], scalar_prefetch = 0 : i64, scratch_operands = 0 : i64, tpu.core_type = #tpu.core_type<tc>} {
    %c0 = arith.constant 0 : index
    %c0_0 = arith.constant 0 : index
    %0 = vector.load %arg3[%c0, %c0_0] : memref<1x128xf32, #tpu.memory_space<vmem>>, vector<1x96xf32>
    %c0_1 = arith.constant 0 : index
    %c96 = arith.constant 96 : index
    %1 = vector.load %arg3[%c0_1, %c96] : memref<1x128xf32, #tpu.memory_space<vmem>>, vector<1x32xf32>
    %c0_2 = arith.constant 0 : index
    %c0_3 = arith.constant 0 : index
    %2 = vector.load %arg0[%c0_2, %c0_3] : memref<16x32xbf16, #tpu.memory_space<vmem>>, vector<16x32xbf16>
    %c0_4 = arith.constant 0 : index
    %c0_5 = arith.constant 0 : index
    %3 = vector.load %arg1[%c0_4, %c0_5] : memref<32x96xbf16, #tpu.memory_space<vmem>>, vector<32x96xbf16>
    %cst = arith.constant dense<0.000000e+00> : vector<16x96xf32>
    %4 = tpu.matmul %2, %3, %cst {dimension_numbers = #tpu.dot_dimension_numbers<[1], [0], [0], [1], [0, 0, 1, 1], [], []>} : vector<16x32xbf16>, vector<32x96xbf16>, vector<16x96xf32> -> vector<16x96xf32>
    %5 = vector.broadcast %0 : vector<1x96xf32> to vector<16x96xf32>
    %6 = arith.addf %4, %5 : vector<16x96xf32>
    %7 = vector.shape_cast %6 : vector<16x96xf32> to vector<2x8x96xf32>
    %8 = vector.extract_strided_slice %7 {offsets = [0, 0, 0], sizes = [2, 8, 32], strides = [1, 1, 1]} : vector<2x8x96xf32> to vector<2x8x32xf32>
    %9 = vector.extract_strided_slice %7 {offsets = [0, 0, 32], sizes = [2, 8, 32], strides = [1, 1, 1]} : vector<2x8x96xf32> to vector<2x8x32xf32>
    %10 = vector.extract_strided_slice %7 {offsets = [0, 0, 64], sizes = [2, 8, 32], strides = [1, 1, 1]} : vector<2x8x96xf32> to vector<2x8x32xf32>
    %11 = tpu.iota {dimensions = array<i32: 0>} : vector<8x8xi32>
    %12 = tpu.iota {dimensions = array<i32: 1>} : vector<8x8xi32>
    %13 = arith.cmpi sge, %11, %12 : vector<8x8xi32>
    %14 = vector.shape_cast %13 : vector<8x8xi1> to vector<1x8x8xi1>
    %15 = vector.extract_strided_slice %8 {offsets = [0, 0, 0], sizes = [2, 8, 8], strides = [1, 1, 1]} : vector<2x8x32xf32> to vector<2x8x8xf32>
    %16 = arith.truncf %15 : vector<2x8x8xf32> to vector<2x8x8xbf16>
    %17 = vector.extract_strided_slice %9 {offsets = [0, 0, 0], sizes = [2, 8, 8], strides = [1, 1, 1]} : vector<2x8x32xf32> to vector<2x8x8xf32>
    %18 = arith.truncf %17 : vector<2x8x8xf32> to vector<2x8x8xbf16>
    %19 = vector.extract_strided_slice %10 {offsets = [0, 0, 0], sizes = [2, 8, 8], strides = [1, 1, 1]} : vector<2x8x32xf32> to vector<2x8x8xf32>
    %20 = arith.truncf %19 : vector<2x8x8xf32> to vector<2x8x8xbf16>
    "tpu.trace_start"() <{level = 10 : i32, message = "btd,bsd->bts"}> : () -> ()
    %cst_6 = arith.constant dense<0.000000e+00> : vector<2x8x8xf32>
    %21 = tpu.matmul %16, %18, %cst_6 {dimension_numbers = #tpu.dot_dimension_numbers<[2], [2], [1], [1], [0, 0, 0, 1, 1, 1], [0], [0]>} : vector<2x8x8xbf16>, vector<2x8x8xbf16>, vector<2x8x8xf32> -> vector<2x8x8xf32>
    "tpu.trace_stop"() : () -> ()
    %cst_7 = arith.constant 0.353553385 : f32
    %22 = vector.broadcast %cst_7 : f32 to vector<2x8x8xf32>
    %23 = arith.mulf %21, %22 : vector<2x8x8xf32>
    %cst_8 = arith.constant -1.000000e+30 : f32
    %24 = vector.shape_cast %14 : vector<1x8x8xi1> to vector<1x8x8xi1>
    %25 = vector.broadcast %24 : vector<1x8x8xi1> to vector<2x8x8xi1>
    %26 = vector.broadcast %cst_8 : f32 to vector<2x8x8xf32>
    %27 = arith.select %25, %23, %26 : vector<2x8x8xi1>, vector<2x8x8xf32>
    %cst_9 = arith.constant dense<0xFF800000> : vector<2x8xf32>
    %28 = vector.multi_reduction <maximumf>, %27, %cst_9 [2] : vector<2x8x8xf32> to vector<2x8xf32>
    %29 = vector.shape_cast %28 : vector<2x8xf32> to vector<2x8x1xf32>
    %30 = vector.broadcast %29 : vector<2x8x1xf32> to vector<2x8x8xf32>
    %31 = arith.subf %27, %30 : vector<2x8x8xf32>
    %32 = math.exp %31 : vector<2x8x8xf32>
    %cst_10 = arith.constant dense<0.000000e+00> : vector<2x8xf32>
    %33 = vector.multi_reduction <add>, %32, %cst_10 [2] : vector<2x8x8xf32> to vector<2x8xf32>
    %34 = vector.shape_cast %33 : vector<2x8xf32> to vector<2x8x1xf32>
    %35 = vector.broadcast %34 : vector<2x8x1xf32> to vector<2x8x8xf32>
    %36 = arith.divf %32, %35 : vector<2x8x8xf32>
    %37 = arith.truncf %36 : vector<2x8x8xf32> to vector<2x8x8xbf16>
    "tpu.trace_start"() <{level = 10 : i32, message = "bts,bsd->btd"}> : () -> ()
    %cst_11 = arith.constant dense<0.000000e+00> : vector<2x8x8xf32>
    %38 = tpu.matmul %37, %20, %cst_11 {dimension_numbers = #tpu.dot_dimension_numbers<[2], [1], [1], [2], [0, 0, 0, 1, 1, 2], [0], [0]>} : vector<2x8x8xbf16>, vector<2x8x8xbf16>, vector<2x8x8xf32> -> vector<2x8x8xf32>
    "tpu.trace_stop"() : () -> ()
    %39 = vector.extract_strided_slice %8 {offsets = [0, 0, 8], sizes = [2, 8, 8], strides = [1, 1, 1]} : vector<2x8x32xf32> to vector<2x8x8xf32>
    %40 = arith.truncf %39 : vector<2x8x8xf32> to vector<2x8x8xbf16>
    %41 = vector.extract_strided_slice %9 {offsets = [0, 0, 8], sizes = [2, 8, 8], strides = [1, 1, 1]} : vector<2x8x32xf32> to vector<2x8x8xf32>
    %42 = arith.truncf %41 : vector<2x8x8xf32> to vector<2x8x8xbf16>
    %43 = vector.extract_strided_slice %10 {offsets = [0, 0, 8], sizes = [2, 8, 8], strides = [1, 1, 1]} : vector<2x8x32xf32> to vector<2x8x8xf32>
    %44 = arith.truncf %43 : vector<2x8x8xf32> to vector<2x8x8xbf16>
    "tpu.trace_start"() <{level = 10 : i32, message = "btd,bsd->bts"}> : () -> ()
    %cst_12 = arith.constant dense<0.000000e+00> : vector<2x8x8xf32>
    %45 = tpu.matmul %40, %42, %cst_12 {dimension_numbers = #tpu.dot_dimension_numbers<[2], [2], [1], [1], [0, 0, 0, 1, 1, 1], [0], [0]>} : vector<2x8x8xbf16>, vector<2x8x8xbf16>, vector<2x8x8xf32> -> vector<2x8x8xf32>
    "tpu.trace_stop"() : () -> ()
    %cst_13 = arith.constant 0.353553385 : f32
    %46 = vector.broadcast %cst_13 : f32 to vector<2x8x8xf32>
    %47 = arith.mulf %45, %46 : vector<2x8x8xf32>
    %cst_14 = arith.constant -1.000000e+30 : f32
    %48 = vector.shape_cast %14 : vector<1x8x8xi1> to vector<1x8x8xi1>
    %49 = vector.broadcast %48 : vector<1x8x8xi1> to vector<2x8x8xi1>
    %50 = vector.broadcast %cst_14 : f32 to vector<2x8x8xf32>
    %51 = arith.select %49, %47, %50 : vector<2x8x8xi1>, vector<2x8x8xf32>
    %cst_15 = arith.constant dense<0xFF800000> : vector<2x8xf32>
    %52 = vector.multi_reduction <maximumf>, %51, %cst_15 [2] : vector<2x8x8xf32> to vector<2x8xf32>
    %53 = vector.shape_cast %52 : vector<2x8xf32> to vector<2x8x1xf32>
    %54 = vector.broadcast %53 : vector<2x8x1xf32> to vector<2x8x8xf32>
    %55 = arith.subf %51, %54 : vector<2x8x8xf32>
    %56 = math.exp %55 : vector<2x8x8xf32>
    %cst_16 = arith.constant dense<0.000000e+00> : vector<2x8xf32>
    %57 = vector.multi_reduction <add>, %56, %cst_16 [2] : vector<2x8x8xf32> to vector<2x8xf32>
    %58 = vector.shape_cast %57 : vector<2x8xf32> to vector<2x8x1xf32>
    %59 = vector.broadcast %58 : vector<2x8x1xf32> to vector<2x8x8xf32>
    %60 = arith.divf %56, %59 : vector<2x8x8xf32>
    %61 = arith.truncf %60 : vector<2x8x8xf32> to vector<2x8x8xbf16>
    "tpu.trace_start"() <{level = 10 : i32, message = "bts,bsd->btd"}> : () -> ()
    %cst_17 = arith.constant dense<0.000000e+00> : vector<2x8x8xf32>
    %62 = tpu.matmul %61, %44, %cst_17 {dimension_numbers = #tpu.dot_dimension_numbers<[2], [1], [1], [2], [0, 0, 0, 1, 1, 2], [0], [0]>} : vector<2x8x8xbf16>, vector<2x8x8xbf16>, vector<2x8x8xf32> -> vector<2x8x8xf32>
    "tpu.trace_stop"() : () -> ()
    %63 = vector.extract_strided_slice %8 {offsets = [0, 0, 16], sizes = [2, 8, 8], strides = [1, 1, 1]} : vector<2x8x32xf32> to vector<2x8x8xf32>
    %64 = arith.truncf %63 : vector<2x8x8xf32> to vector<2x8x8xbf16>
    %65 = vector.extract_strided_slice %9 {offsets = [0, 0, 16], sizes = [2, 8, 8], strides = [1, 1, 1]} : vector<2x8x32xf32> to vector<2x8x8xf32>
    %66 = arith.truncf %65 : vector<2x8x8xf32> to vector<2x8x8xbf16>
    %67 = vector.extract_strided_slice %10 {offsets = [0, 0, 16], sizes = [2, 8, 8], strides = [1, 1, 1]} : vector<2x8x32xf32> to vector<2x8x8xf32>
    %68 = arith.truncf %67 : vector<2x8x8xf32> to vector<2x8x8xbf16>
    "tpu.trace_start"() <{level = 10 : i32, message = "btd,bsd->bts"}> : () -> ()
    %cst_18 = arith.constant dense<0.000000e+00> : vector<2x8x8xf32>
    %69 = tpu.matmul %64, %66, %cst_18 {dimension_numbers = #tpu.dot_dimension_numbers<[2], [2], [1], [1], [0, 0, 0, 1, 1, 1], [0], [0]>} : vector<2x8x8xbf16>, vector<2x8x8xbf16>, vector<2x8x8xf32> -> vector<2x8x8xf32>
    "tpu.trace_stop"() : () -> ()
    %cst_19 = arith.constant 0.353553385 : f32
    %70 = vector.broadcast %cst_19 : f32 to vector<2x8x8xf32>
    %71 = arith.mulf %69, %70 : vector<2x8x8xf32>
    %cst_20 = arith.constant -1.000000e+30 : f32
    %72 = vector.shape_cast %14 : vector<1x8x8xi1> to vector<1x8x8xi1>
    %73 = vector.broadcast %72 : vector<1x8x8xi1> to vector<2x8x8xi1>
    %74 = vector.broadcast %cst_20 : f32 to vector<2x8x8xf32>
    %75 = arith.select %73, %71, %74 : vector<2x8x8xi1>, vector<2x8x8xf32>
    %cst_21 = arith.constant dense<0xFF800000> : vector<2x8xf32>
    %76 = vector.multi_reduction <maximumf>, %75, %cst_21 [2] : vector<2x8x8xf32> to vector<2x8xf32>
    %77 = vector.shape_cast %76 : vector<2x8xf32> to vector<2x8x1xf32>
    %78 = vector.broadcast %77 : vector<2x8x1xf32> to vector<2x8x8xf32>
    %79 = arith.subf %75, %78 : vector<2x8x8xf32>
    %80 = math.exp %79 : vector<2x8x8xf32>
    %cst_22 = arith.constant dense<0.000000e+00> : vector<2x8xf32>
    %81 = vector.multi_reduction <add>, %80, %cst_22 [2] : vector<2x8x8xf32> to vector<2x8xf32>
    %82 = vector.shape_cast %81 : vector<2x8xf32> to vector<2x8x1xf32>
    %83 = vector.broadcast %82 : vector<2x8x1xf32> to vector<2x8x8xf32>
    %84 = arith.divf %80, %83 : vector<2x8x8xf32>
    %85 = arith.truncf %84 : vector<2x8x8xf32> to vector<2x8x8xbf16>
    "tpu.trace_start"() <{level = 10 : i32, message = "bts,bsd->btd"}> : () -> ()
    %cst_23 = arith.constant dense<0.000000e+00> : vector<2x8x8xf32>
    %86 = tpu.matmul %85, %68, %cst_23 {dimension_numbers = #tpu.dot_dimension_numbers<[2], [1], [1], [2], [0, 0, 0, 1, 1, 2], [0], [0]>} : vector<2x8x8xbf16>, vector<2x8x8xbf16>, vector<2x8x8xf32> -> vector<2x8x8xf32>
    "tpu.trace_stop"() : () -> ()
    %87 = vector.extract_strided_slice %8 {offsets = [0, 0, 24], sizes = [2, 8, 8], strides = [1, 1, 1]} : vector<2x8x32xf32> to vector<2x8x8xf32>
    %88 = arith.truncf %87 : vector<2x8x8xf32> to vector<2x8x8xbf16>
    %89 = vector.extract_strided_slice %9 {offsets = [0, 0, 24], sizes = [2, 8, 8], strides = [1, 1, 1]} : vector<2x8x32xf32> to vector<2x8x8xf32>
    %90 = arith.truncf %89 : vector<2x8x8xf32> to vector<2x8x8xbf16>
    %91 = vector.extract_strided_slice %10 {offsets = [0, 0, 24], sizes = [2, 8, 8], strides = [1, 1, 1]} : vector<2x8x32xf32> to vector<2x8x8xf32>
    %92 = arith.truncf %91 : vector<2x8x8xf32> to vector<2x8x8xbf16>
    "tpu.trace_start"() <{level = 10 : i32, message = "btd,bsd->bts"}> : () -> ()
    %cst_24 = arith.constant dense<0.000000e+00> : vector<2x8x8xf32>
    %93 = tpu.matmul %88, %90, %cst_24 {dimension_numbers = #tpu.dot_dimension_numbers<[2], [2], [1], [1], [0, 0, 0, 1, 1, 1], [0], [0]>} : vector<2x8x8xbf16>, vector<2x8x8xbf16>, vector<2x8x8xf32> -> vector<2x8x8xf32>
    "tpu.trace_stop"() : () -> ()
    %cst_25 = arith.constant 0.353553385 : f32
    %94 = vector.broadcast %cst_25 : f32 to vector<2x8x8xf32>
    %95 = arith.mulf %93, %94 : vector<2x8x8xf32>
    %cst_26 = arith.constant -1.000000e+30 : f32
    %96 = vector.shape_cast %14 : vector<1x8x8xi1> to vector<1x8x8xi1>
    %97 = vector.broadcast %96 : vector<1x8x8xi1> to vector<2x8x8xi1>
    %98 = vector.broadcast %cst_26 : f32 to vector<2x8x8xf32>
    %99 = arith.select %97, %95, %98 : vector<2x8x8xi1>, vector<2x8x8xf32>
    %cst_27 = arith.constant dense<0xFF800000> : vector<2x8xf32>
    %100 = vector.multi_reduction <maximumf>, %99, %cst_27 [2] : vector<2x8x8xf32> to vector<2x8xf32>
    %101 = vector.shape_cast %100 : vector<2x8xf32> to vector<2x8x1xf32>
    %102 = vector.broadcast %101 : vector<2x8x1xf32> to vector<2x8x8xf32>
    %103 = arith.subf %99, %102 : vector<2x8x8xf32>
    %104 = math.exp %103 : vector<2x8x8xf32>
    %cst_28 = arith.constant dense<0.000000e+00> : vector<2x8xf32>
    %105 = vector.multi_reduction <add>, %104, %cst_28 [2] : vector<2x8x8xf32> to vector<2x8xf32>
    %106 = vector.shape_cast %105 : vector<2x8xf32> to vector<2x8x1xf32>
    %107 = vector.broadcast %106 : vector<2x8x1xf32> to vector<2x8x8xf32>
    %108 = arith.divf %104, %107 : vector<2x8x8xf32>
    %109 = arith.truncf %108 : vector<2x8x8xf32> to vector<2x8x8xbf16>
    "tpu.trace_start"() <{level = 10 : i32, message = "bts,bsd->btd"}> : () -> ()
    %cst_29 = arith.constant dense<0.000000e+00> : vector<2x8x8xf32>
    %110 = tpu.matmul %109, %92, %cst_29 {dimension_numbers = #tpu.dot_dimension_numbers<[2], [1], [1], [2], [0, 0, 0, 1, 1, 2], [0], [0]>} : vector<2x8x8xbf16>, vector<2x8x8xbf16>, vector<2x8x8xf32> -> vector<2x8x8xf32>
    "tpu.trace_stop"() : () -> ()
    %111 = tpu.concatenate %38, %62, %86, %110 in 2 : vector<2x8x8xf32>, vector<2x8x8xf32>, vector<2x8x8xf32>, vector<2x8x8xf32> -> vector<2x8x32xf32>
    %112 = vector.shape_cast %111 : vector<2x8x32xf32> to vector<16x32xf32>
    %113 = arith.truncf %112 : vector<16x32xf32> to vector<16x32xbf16>
    %c0_30 = arith.constant 0 : index
    %c0_31 = arith.constant 0 : index
    %114 = vector.load %arg2[%c0_30, %c0_31] : memref<32x32xbf16, #tpu.memory_space<vmem>>, vector<32x32xbf16>
    %cst_32 = arith.constant dense<0.000000e+00> : vector<16x32xf32>
    %115 = tpu.matmul %113, %114, %cst_32 {dimension_numbers = #tpu.dot_dimension_numbers<[1], [0], [0], [1], [0, 0, 1, 1], [], []>} : vector<16x32xbf16>, vector<32x32xbf16>, vector<16x32xf32> -> vector<16x32xf32>
    %116 = vector.broadcast %1 : vector<1x32xf32> to vector<16x32xf32>
    %117 = arith.addf %115, %116 : vector<16x32xf32>
    %c0_33 = arith.constant 0 : index
    %c0_34 = arith.constant 0 : index
    %118 = vector.load %arg4[%c0_33, %c0_34] : memref<16x32xf32, #tpu.memory_space<vmem>>, vector<16x32xf32>
    tpu.vector_store %arg4[%c0_33, %c0_34], %117 {strides = array<i32>} : memref<16x32xf32, #tpu.memory_space<vmem>>, vector<16x32xf32>,
    return
  }
}

</mosaic_0001>

<bundles_post_ra>
// kernel: causal_self_attention.1
= control target key start
LH: loop header
LB: loop body
LE: loop exit
PB: predicated region body
PF: predicated region fallthrough
CT: control target
= control target key end

     0   :  { %s1087_s0 = inlined_call_operand.vmem [shape: bf16[16,32], index: 0, kind: input, shape index: {}]   ;;  %s1088_s1 = inlined_call_operand.vmem [shape: bf16[32,96], index: 1, kind: input, shape index: {}]   ;;  %s1089_s2 = inlined_call_operand.vmem [shape: bf16[32,32], index: 2, kind: input, shape index: {}]   ;;  %s1090_s3 = inlined_call_operand.vmem [shape: f32[1,128], index: 3, kind: input, shape index: {}]   ;;  %s1091_s4 = inlined_call_operand.hbm [shape: f32[16,32], index: 4, kind: output, shape index: {}]  }
   0x1   :  { %v774_v0 = vld [vmem:[%s1088_s1 + $0x8] sm:$0xff] }
   0x2   :  { %9 = vsyncpa [#allocation3], 0  ;;  %56 = vmatpush.bf16.msra.mxu0 %v774_v0  ;;  %v773_v1 = vld [vmem:[%s1088_s1] sm:$0xff]  ;;  %vm46_vm0 = vcmask 261120   ;;  %s869_s1 = smov 88   ;;  %s870_s23 = smov 96   ;;  %v64_v36 = vlaneseq }
   0x3   :  { %v772_v2 = vld [vmem:[%s1087_s0] sm:$0xff]  ;;  %s868_s0 = smov 120   ;;  %s872_s24 = smov 80   ;;  %vm76_vm1 = vcmask 64512   ;;  %vm181_vm3 = vcmask 1043456  }
   0x4   :  { %v923_v3 = vld [vmem:[%s1090_s3] ss:$0 sm:$0xff]  ;;  %s871_s3 = smov 112   ;;  %s873_s25 = smov 72   ;;  %v65_v37 = vshrl.u32 %v64_v36, 7  ;;  %v67_v38 = vand.u32 127, %v64_v36 }
   0x5   :  { %s874_s26 = smov 104   ;;  %s875_s27 = smov 56  }
   0x6   :  { %57 = vmatpush.bf16.msra.mxu0 %v773_v1  ;;  %vm961_vm2 = vcmp.ge.s32.totalorder %v65_v37, %v67_v38  ;;  %s876_s28 = smov 64   ;;  %s877_s29 = smov 40  }
   0x7   :  { %s878_s30 = smov 48   ;;  %s879_s5 = smov 8  }
   0x8   :  { %s880_s6 = smov 16   ;;  %s881_s7 = smov 24  }
   0x9   :  { %746 = vmatmul.msk.bf16.vlgmr.msra.gmra.mxu0 %vm46_vm0, %v772_v2  ;;  %s882_s8 = smov 32   ;;  %s722_s14 = sshll.u32 %s1091_s4, 4  ;;  %s723_s14 = int_to_ptr.hbm [resolvable:$true] %s722_s14 }
   0xa   :  { %s883_s15 = smov [#allocation2]   ;;  %s884_s17 = smov 128  }
   0xb   :  { %s720_s16 = sshll.u32 %s883_s15, 4  ;;  %s721_s16 = int_to_ptr.vmem [resolvable:$true] %s720_s16 }
  0x86   :  { %v59_v4 = vpop.f32.mrf.mxu0 }
  0x87   :  { %v60_v5 = vadd.f32 %v923_v3, %v59_v4 }
  0x89   :  { %v69_v6 = vpack.c.bf16 %v60_v5, %v60_v5 }
  0x8b   :  { %v72_v7 = vunpack.c.l.b16 %v69_v6 }
  0x8d   :  { %v926_v8 = vpack.c.b16 %v72_v7, %v72_v7 }
  0x8e   :  { %v61_v9 = vpop.f32.mrf.mxu0 }
  0x8f   :  { %v62_v10 = vadd.f32 %v923_v3, %v61_v9  ;;  %219 = vrot.lane.b32.xlu2 %v926_v8, %s868_s0  ;;  %221 = vrot.lane.b32.xlu1 %v926_v8, %s869_s1 }
  0x90   :  { %74 = vrot.lane.b32.xlu0 %v926_v8, %s870_s23 }
  0x91   :  { %v70_v11 = vpack.c.bf16 %v62_v10, %v62_v10 }
  0x93   :  { %v97_v12 = vunpack.c.l.b16 %v70_v11 }
  0x95   :  { %v932_v13 = vpack.c.b16 %v97_v12, %v97_v12 }
  0x97   :  { %242 = vrot.lane.b32.xlu2 %v932_v13, %s868_s0  ;;  %244 = vrot.lane.b32.xlu1 %v932_v13, %s869_s1 }
  0x98   :  { %99 = vrot.lane.b32.xlu0 %v932_v13, %s870_s23 }
  0x9f   :  { %361 = vrot.lane.b32.xlu2 %v926_v8, %s871_s3  ;;  %386 = vrot.lane.b32.xlu1 %v932_v13, %s872_s24 }
  0xa0   :  { %363 = vrot.lane.b32.xlu0 %v926_v8, %s872_s24 }
  0xa7   :  { %528 = vrot.lane.b32.xlu2 %v932_v13, %s873_s25  ;;  %505 = vrot.lane.b32.xlu1 %v926_v8, %s873_s25 }
  0xa8   :  { %384 = vrot.lane.b32.xlu0 %v932_v13, %s871_s3 }
  0xaf   :  { %526 = vrot.lane.b32.xlu1 %v932_v13, %s874_s26 }
  0xb0   :  { %503 = vrot.lane.b32.xlu0 %v926_v8, %s874_s26 }
  0xe9   :  { %v220_v14 = vpop.permute.xlu2 %219 }
  0xf1   :  { %v243_v19 = vpop.permute.xlu2 %242 }
  0xf9   :  { %v362_v24 = vpop.permute.xlu2 %361 }
 0x101   :  { %v222_v15 = vpop.permute.xlu1 %221  ;;  %v529_v29 = vpop.permute.xlu2 %528 }
 0x102   :  { %v75_v16 = vpop.permute.xlu0 %74  ;;  %v227_v17 = vsel %vm76_vm1, %v222_v15, 0  ;;  %v534_v32 = vsel %vm76_vm1, %v529_v29, 0 }
 0x103   :  { %v81_v18 = vsel %vm76_vm1, %v75_v16, 0  ;;  %236 = vmatpush.bf16.xpose.msrb.mxu0 %v227_v17 }
 0x104   :  { %90 = vmatpush.bf16.xpose.msra.mxu1 %v81_v18 }
 0x109   :  { %v245_v20 = vpop.permute.xlu1 %244 }
 0x10a   :  { %v100_v21 = vpop.permute.xlu0 %99  ;;  %751 = vmatmul.msk.bf16.vlgmr.msrb.gmra.mxu0 %vm76_vm1, %v220_v14  ;;  %v250_v22 = vsel %vm76_vm1, %v245_v20, 0 }
 0x10b   :  { %747 = vmatmul.msk.bf16.vlgmr.msra.gmra.mxu1 %vm76_vm1, %v69_v6  ;;  %v105_v23 = vsel %vm76_vm1, %v100_v21, 0 }
 0x10c   :  { %114 = vmatpush.bf16.xpose.msra.mxu2 %v105_v23  ;;  %259 = vmatpush.bf16.xpose.msrb.mxu1 %v250_v22 }
 0x111   :  { %v387_v25 = vpop.permute.xlu1 %386 }
 0x112   :  { %v392_v26 = vsel %vm76_vm1, %v387_v25, 0  ;;  %v364_v27 = vpop.permute.xlu0 %363 }
 0x113   :  { %v369_v28 = vsel %vm76_vm1, %v364_v27, 0  ;;  %748 = vmatmul.msk.bf16.vlgmr.msra.gmra.mxu2 %vm76_vm1, %v70_v11 }
 0x114   :  { %401 = vmatpush.bf16.xpose.msra.mxu1 %v392_v26  ;;  %378 = vmatpush.bf16.xpose.msra.mxu0 %v369_v28 }
 0x119   :  { %v506_v30 = vpop.permute.xlu1 %505 }
 0x11a   :  { %v511_v31 = vsel %vm76_vm1, %v506_v30, 0  ;;  %v385_v33 = vpop.permute.xlu0 %384 }
 0x11b   :  { %752 = vmatmul.msk.bf16.vlgmr.msrb.gmra.mxu1 %vm76_vm1, %v243_v19  ;;  %755 = vmatmul.msk.bf16.vlgmr.msra.gmra.mxu0 %vm76_vm1, %v362_v24 }
 0x11c   :  { %543 = vmatpush.bf16.xpose.msrb.mxu1 %v534_v32  ;;  %520 = vmatpush.bf16.xpose.msrb.mxu0 %v511_v31 }
 0x121   :  { %v527_v35 = vpop.permute.xlu1 %526 }
 0x122   :  { %v504_v34 = vpop.permute.xlu0 %503 }
 0x12b   :  { %756 = vmatmul.msk.bf16.vlgmr.msra.gmra.mxu1 %vm76_vm1, %v385_v33  ;;  %759 = vmatmul.msk.bf16.vlgmr.msrb.gmra.mxu0 %vm76_vm1, %v504_v34 }
 0x13b   :  { %760 = vmatmul.msk.bf16.vlgmr.msrb.gmra.mxu1 %vm76_vm1, %v527_v35 }
 0x187   :  { %v238_v39 = vpop.f32.mrf.mxu0 }
 0x188   :  { %v92_v41 = vpop.f32.mrf.mxu1  ;;  %v265_v42 = vmul.f32 0.35355338, %v238_v39 }
 0x189   :  { %v120_v43 = vmul.f32 0.35355338, %v92_v41 }
 0x18a   :  { %v267_v44 = vsel %vm961_vm2, %v265_v42, -1e+30 }
 0x18b   :  { %v269_v45 = vsel %vm76_vm1, %v267_v44, -inf  ;;  %v124_v46 = vsel %vm961_vm2, %v120_v43, -1e+30 }
 0x18c   :  { %270 = vmax.xlane.f32.xlu1 %v269_v45  ;;  %v126_v47 = vsel %vm76_vm1, %v124_v46, -inf }
 0x18d   :  { %127 = vmax.xlane.f32.xlu2 %v126_v47 }
 0x18f   :  { %v240_v48 = vpop.f32.mrf.mxu0 }
 0x190   :  { %v94_v49 = vpop.f32.mrf.mxu1 }
 0x196   :  { %v116_v50 = vpop.f32.mrf.mxu2 }
 0x197   :  { %v121_v51 = vmul.f32 0.35355338, %v116_v50 }
 0x198   :  { %v261_v52 = vpop.f32.mrf.mxu1  ;;  %v380_v53 = vpop.f32.mrf.mxu0 }
 0x199   :  { %v266_v54 = vmul.f32 0.35355338, %v261_v52  ;;  %v407_v55 = vmul.f32 0.35355338, %v380_v53  ;;  %v125_v56 = vsel %vm961_vm2, %v121_v51, -1e+30 }
 0x19a   :  { %v129_v57 = vsel %vm76_vm1, %v125_v56, -inf }
 0x19b   :  { %130 = vmax.xlane.f32.xlu0 %v129_v57  ;;  %v268_v58 = vsel %vm961_vm2, %v266_v54, -1e+30  ;;  %v978_v59 = vsel %vm961_vm2, %v407_v55, -1e+30 }
 0x19c   :  { %v272_v60 = vsel %vm76_vm1, %v268_v58, -inf  ;;  %v411_v15 = vsel %vm76_vm1, %v978_v59, -inf }
 0x19d   :  { %273 = vmax.xlane.f32.xlu2 %v272_v60 }
 0x19e   :  { %v118_v61 = vpop.f32.mrf.mxu2 }
 0x1a0   :  { %v263_v62 = vpop.f32.mrf.mxu1  ;;  %v382_v63 = vpop.f32.mrf.mxu0 }
 0x1a5   :  { %340 = vrot.lane.b32.xlu1 %v932_v13, %s875_s27 }
 0x1a8   :  { %v403_v0 = vpop.f32.mrf.mxu1  ;;  %v522_v1 = vpop.f32.mrf.mxu0 }
 0x1a9   :  { %v408_v2 = vmul.f32 0.35355338, %v403_v0  ;;  %v549_v16 = vmul.f32 0.35355338, %v522_v1 }
 0x1ab   :  { %v984_v4 = vsel %vm961_vm2, %v408_v2, -1e+30  ;;  %v551_v17 = vsel %vm961_vm2, %v549_v16, -1e+30 }
 0x1ac   :  { %v414_v5 = vsel %vm76_vm1, %v984_v4, -inf  ;;  %v553_v18 = vsel %vm76_vm1, %v551_v17, -inf }
 0x1ad   :  { %415 = vmax.xlane.f32.xlu0 %v414_v5 }
 0x1b0   :  { %v405_v6 = vpop.f32.mrf.mxu1  ;;  %v524_v7 = vpop.f32.mrf.mxu0 }
 0x1b5   :  { %176 = vrot.lane.b32.xlu2 %v926_v8, %s876_s28 }
 0x1b8   :  { %v545_v9 = vpop.f32.mrf.mxu1 }
 0x1b9   :  { %v550_v10 = vmul.f32 0.35355338, %v545_v9 }
 0x1bb   :  { %v552_v11 = vsel %vm961_vm2, %v550_v10, -1e+30 }
 0x1bc   :  { %v556_v12 = vsel %vm76_vm1, %v552_v11, -inf }
 0x1bd   :  { %557 = vmax.xlane.f32.xlu0 %v556_v12 }
 0x1c0   :  { %v547_v14 = vpop.f32.mrf.mxu1 }
 0x1d1   :  { %198 = vrot.lane.b32.xlu0 %v932_v13, %s876_s28 }
 0x1de   :  { %412 = vmax.xlane.f32.xlu2 %v411_v15 }
 0x1e6   :  { %554 = vmax.xlane.f32.xlu2 %v553_v18 }
 0x1fe   :  { %319 = vrot.lane.b32.xlu2 %v926_v8, %s875_s27 }
 0x1ff   :  { %v271_v19 = vpop.xlane.xlu1 %270 }
 0x200   :  { %v275_v20 = vsub.f32 %v267_v44, %v271_v19  ;;  %v128_v21 = vpop.xlane.xlu2 %127 }
 0x201   :  { %v132_v22 = vsub.f32 %v124_v46, %v128_v21 }
 0x202   :  { %v277_v23 = vmul.f32 1.442695, %v275_v20 }
 0x203   :  { %v134_v24 = vmul.f32 1.442695, %v132_v22 }
 0x204   :  { %810 = vpow2.f32 %v277_v23 }
 0x205   :  { %812 = vpow2.f32 %v134_v24 }
 0x20a   :  { %v999_v25 = vpop.eup %810 }
 0x20b   :  { %v1001_v26 = vpop.eup %812  ;;  %v281_v27 = vsel %vm76_vm1, %v999_v25, 0.0 }
 0x20c   :  { %v138_v28 = vsel %vm76_vm1, %v1001_v26, 0.0  ;;  %282 = vadd.xlane.f32.xlu0 %v281_v27 }
 0x20d   :  { %139 = vadd.xlane.f32.xlu1 %v138_v28 }
 0x20e   :  { %v131_v29 = vpop.xlane.xlu0 %130 }
 0x20f   :  { %v133_v30 = vsub.f32 %v125_v56, %v131_v29 }
 0x210   :  { %v274_v31 = vpop.xlane.xlu2 %273 }
 0x211   :  { %v136_v32 = vmul.f32 1.442695, %v133_v30  ;;  %v276_v33 = vsub.f32 %v268_v58, %v274_v31 }
 0x213   :  { %814 = vpow2.f32 %v136_v32  ;;  %v279_v34 = vmul.f32 1.442695, %v276_v33 }
 0x215   :  { %816 = vpow2.f32 %v279_v34 }
 0x217   :  { %v341_v1 = vpop.permute.xlu1 %340 }
 0x218   :  { %v177_v35 = vpop.permute.xlu2 %176  ;;  %v346_v34 = vsel %vm181_vm3, %v341_v1, 0 }
 0x219   :  { %v1007_v36 = vpop.eup %814  ;;  %v183_v37 = vsel %vm181_vm3, %v177_v35, 0 }
 0x21a   :  { %192 = vmatpush.bf16.msra.mxu3 %v183_v37  ;;  %v141_v38 = vsel %vm76_vm1, %v1007_v36, 0.0 }
 0x21b   :  { %142 = vadd.xlane.f32.xlu1 %v141_v38  ;;  %v1012_v39 = vpop.eup %816 }
 0x21c   :  { %v284_v40 = vsel %vm76_vm1, %v1012_v39, 0.0 }
 0x220   :  { %v416_v41 = vpop.xlane.xlu0 %415 }
 0x221   :  { %v418_v51 = vsub.f32 %v984_v4, %v416_v41 }
 0x223   :  { %285 = vadd.xlane.f32.xlu1 %v284_v40  ;;  %v421_v53 = vmul.f32 1.442695, %v418_v51 }
 0x230   :  { %v558_v42 = vpop.xlane.xlu0 %557 }
 0x231   :  { %v560_v43 = vsub.f32 %v552_v11, %v558_v42 }
 0x233   :  { %v563_v44 = vmul.f32 1.442695, %v560_v43 }
 0x235   :  { %818 = vpow2.f32 %v563_v44 }
 0x23b   :  { %v1016_v45 = vpop.eup %818 }
 0x23c   :  { %v568_v46 = vsel %vm76_vm1, %v1016_v45, 0.0 }
 0x23d   :  { %569 = vadd.xlane.f32.xlu2 %v568_v46 }
 0x243   :  { %v199_v47 = vpop.permute.xlu0 %198 }
 0x244   :  { %v204_v48 = vsel %vm181_vm3, %v199_v47, 0 }
 0x245   :  { %213 = vmatpush.bf16.msrb.mxu3 %v204_v48 }
 0x251   :  { %v413_v49 = vpop.xlane.xlu2 %412 }
 0x252   :  { %v417_v50 = vsub.f32 %v978_v59, %v413_v49 }
 0x254   :  { %v419_v52 = vmul.f32 1.442695, %v417_v50 }
 0x256   :  { %820 = vpow2.f32 %v419_v52 }
 0x257   :  { %822 = vpow2.f32 %v421_v53 }
 0x259   :  { %v555_v54 = vpop.xlane.xlu2 %554 }
 0x25a   :  { %v559_v55 = vsub.f32 %v551_v17, %v555_v54 }
 0x25c   :  { %v1023_v56 = vpop.eup %820  ;;  %v561_v57 = vmul.f32 1.442695, %v559_v55 }
 0x25d   :  { %v423_v58 = vsel %vm76_vm1, %v1023_v56, 0.0  ;;  %v1027_v61 = vpop.eup %822 }
 0x25e   :  { %824 = vpow2.f32 %v561_v57  ;;  %424 = vadd.xlane.f32.xlu1 %v423_v58  ;;  %v426_v0 = vsel %vm76_vm1, %v1027_v61, 0.0 }
 0x261   :  { %v320_v60 = vpop.permute.xlu2 %319 }
 0x262   :  { %v325_v59 = vsel %vm181_vm3, %v320_v60, 0 }
 0x263   :  { %334 = vmatpush.bf16.msrb.mxu2 %v325_v59 }
 0x264   :  { %v1030_v62 = vpop.eup %824 }
 0x265   :  { %v565_v63 = vsel %vm76_vm1, %v1030_v62, 0.0 }
 0x266   :  { %566 = vadd.xlane.f32.xlu0 %v565_v63  ;;  %427 = vadd.xlane.f32.xlu1 %v426_v0 }
 0x27a   :  { %624 = vrot.lane.b32.xlu0 %v932_v13, %s877_s29 }
 0x27f   :  { %461 = vrot.lane.b32.xlu1 %v926_v8, %s878_s30  ;;  %v283_v2 = vpop.xlane.xlu0 %282 }
 0x280   :  { %v140_v4 = vpop.xlane.xlu1 %139  ;;  %826 = vrcp.f32 %v283_v2  ;;  %v298_v15 = vand.u32 2147483648, %v283_v2  ;;  %v296_v17 = vand.u32 2147483647, %v283_v2  ;;  %vm292_vm6 = vweird.f32 %v283_v2 }
 0x281   :  { %828 = vrcp.f32 %v140_v4  ;;  %v155_v12 = vand.u32 2147483648, %v140_v4  ;;  %v153_v18 = vand.u32 2147483647, %v140_v4  ;;  %vm149_vm7 = vweird.f32 %v140_v4 }
 0x282   :  { %vm297_vm10 = vcmp.eq.f32.partialorder %v296_v17, 8.507059e+37 }
 0x283   :  { %v156_v22 = vor.u32 1.1754944e-38, %v155_v12  ;;  %vm154_vm11 = vcmp.eq.f32.partialorder %v153_v18, 8.507059e+37 }
 0x286   :  { %v827_v5 = vpop.eup %826 }
 0x287   :  { %v829_v6 = vpop.eup %828  ;;  %v288_v7 = vmul.f32 %v827_v5, %v283_v2  ;;  %482 = vrot.lane.b32.xlu1 %v932_v13, %s878_s30  ;;  %vm293_vm4 = vweird.f32 %v827_v5  ;;  %v299_v13 = vor.u32 1.1754944e-38, %v298_v15 }
 0x288   :  { %v145_v9 = vmul.f32 %v829_v6, %v140_v4  ;;  %vm150_vm5 = vweird.f32 %v829_v6  ;;  %vm294_vm8 = vmor %vm292_vm6, %vm293_vm4 }
 0x289   :  { %v289_v10 = vsub.f32 1.0, %v288_v7  ;;  %vm151_vm9 = vmor %vm149_vm7, %vm150_vm5 }
 0x28a   :  { %v146_v11 = vsub.f32 1.0, %v145_v9 }
 0x28b   :  { %v290_v14 = vmul.f32 %v827_v5, %v289_v10 }
 0x28c   :  { %v147_v16 = vmul.f32 %v829_v6, %v146_v11 }
 0x28d   :  { %v291_v19 = vadd.f32 %v827_v5, %v290_v14 }
 0x28e   :  { %v143_v20 = vpop.xlane.xlu1 %142  ;;  %v148_v21 = vadd.f32 %v829_v6, %v147_v16 }
 0x28f   :  { %830 = vrcp.f32 %v143_v20  ;;  %603 = vrot.lane.b32.xlu1 %v926_v8, %s877_s29  ;;  %v295_v24 = vsel %vm294_vm8, %v827_v5, %v291_v19  ;;  %v170_v38 = vand.u32 2147483648, %v143_v20  ;;  %vm164_vm13 = vweird.f32 %v143_v20 }
 0x290   :  { %v152_v23 = vsel %vm151_vm9, %v829_v6, %v148_v21  ;;  %v300_v28 = vsel %vm297_vm10, %v299_v13, %v295_v24 }
 0x291   :  { %v157_v27 = vsel %vm154_vm11, %v156_v22, %v152_v23  ;;  %v301_v30 = vmul.f32 %v999_v25, %v300_v28  ;;  %v171_v42 = vor.u32 1.1754944e-38, %v170_v38 }
 0x292   :  { %v158_v29 = vmul.f32 %v1001_v26, %v157_v27  ;;  %v168_v26 = vand.u32 2147483647, %v143_v20 }
 0x293   :  { %v317_v32 = vpack.c.bf16 %v301_v30, %v301_v30 }
 0x294   :  { %v174_v31 = vpack.c.bf16 %v158_v29, %v158_v29  ;;  %vm169_vm15 = vcmp.eq.f32.partialorder %v168_v26, 8.507059e+37 }
 0x295   :  { %v831_v33 = vpop.eup %830  ;;  %753 = vmatmul.msk.bf16.vlgmr.msrb.gmra.mxu2 %vm76_vm1, %v317_v32 }
 0x296   :  { %v160_v35 = vmul.f32 %v831_v33, %v143_v20  ;;  %749 = vmatmul.msk.bf16.vlgmr.msra.gmra.mxu3 %vm76_vm1, %v174_v31  ;;  %v286_v37 = vpop.xlane.xlu1 %285  ;;  %vm165_vm12 = vweird.f32 %v831_v33 }
 0x297   :  { %832 = vrcp.f32 %v286_v37  ;;  %355 = vmatpush.bf16.msra.mxu3 %v346_v34  ;;  %vm166_vm14 = vmor %vm164_vm13, %vm165_vm12  ;;  %v313_v52 = vand.u32 2147483648, %v286_v37  ;;  %vm307_vm4 = vweird.f32 %v286_v37  ;;  %v311_v53 = vand.u32 2147483647, %v286_v37 }
 0x298   :  { %v161_v8 = vsub.f32 1.0, %v160_v35 }
 0x299   :  { %v314_v55 = vor.u32 1.1754944e-38, %v313_v52  ;;  %vm312_vm6 = vcmp.eq.f32.partialorder %v311_v53, 8.507059e+37 }
 0x29a   :  { %v162_v40 = vmul.f32 %v831_v33, %v161_v8 }
 0x29c   :  { %v163_v41 = vadd.f32 %v831_v33, %v162_v40 }
 0x29d   :  { %v833_v25 = vpop.eup %832 }
 0x29e   :  { %v303_v43 = vmul.f32 %v833_v25, %v286_v37  ;;  %v167_v44 = vsel %vm166_vm14, %v831_v33, %v163_v41  ;;  %vm308_vm2 = vweird.f32 %v833_v25 }
 0x29f   :  { %v172_v46 = vsel %vm169_vm15, %v171_v42, %v167_v44  ;;  %vm309_vm5 = vmor %vm307_vm4, %vm308_vm2 }
 0x2a0   :  { %v304_v47 = vsub.f32 1.0, %v303_v43  ;;  %v173_v48 = vmul.f32 %v1007_v36, %v172_v46 }
 0x2a2   :  { %v305_v49 = vmul.f32 %v833_v25, %v304_v47  ;;  %v175_v50 = vpack.c.bf16 %v173_v48, %v173_v48 }
 0x2a4   :  { %v306_v51 = vadd.f32 %v833_v25, %v305_v49 }
 0x2a6   :  { %750 = vmatmul.msk.bf16.vlgmr.msrb.gmra.mxu3 %vm76_vm1, %v175_v50  ;;  %v310_v54 = vsel %vm309_vm5, %v833_v25, %v306_v51 }
 0x2a7   :  { %v315_v57 = vsel %vm312_vm6, %v314_v55, %v310_v54 }
 0x2a8   :  { %v316_v58 = vmul.f32 %v1012_v39, %v315_v57 }
 0x2aa   :  { %v318_v60 = vpack.c.bf16 %v316_v58, %v316_v58 }
 0x2b0   :  { %v1051_v7 = vpop.xlane.xlu2 %569 }
 0x2b1   :  { %v595_v48 = vand.u32 2147483647, %v1051_v7 }
 0x2b6   :  { %754 = vmatmul.msk.bf16.vlgmr.msra.gmra.mxu3 %vm76_vm1, %v318_v60 }
 0x2d1   :  { %v425_v36 = vpop.xlane.xlu1 %424 }
 0x2d2   :  { %834 = vrcp.f32 %v425_v36  ;;  %v440_v11 = vand.u32 2147483648, %v425_v36  ;;  %vm434_vm8 = vweird.f32 %v425_v36  ;;  %v438_v12 = vand.u32 2147483647, %v425_v36 }
 0x2d4   :  { %v441_v17 = vor.u32 1.1754944e-38, %v440_v11  ;;  %vm439_vm10 = vcmp.eq.f32.partialorder %v438_v12, 8.507059e+37 }
 0x2d8   :  { %v835_v59 = vpop.eup %834 }
 0x2d9   :  { %v428_v63 = vpop.xlane.xlu1 %427  ;;  %v430_v0 = vmul.f32 %v835_v59, %v425_v36  ;;  %v567_v2 = vpop.xlane.xlu0 %566  ;;  %vm435_vm7 = vweird.f32 %v835_v59 }
 0x2da   :  { %836 = vrcp.f32 %v428_v63  ;;  %vm436_vm9 = vmor %vm434_vm8, %vm435_vm7  ;;  %v455_v22 = vand.u32 2147483648, %v428_v63  ;;  %vm449_vm12 = vweird.f32 %v428_v63  ;;  %v453_v23 = vand.u32 2147483647, %v428_v63 }
 0x2db   :  { %v431_v1 = vsub.f32 1.0, %v430_v0  ;;  %838 = vrcp.f32 %v567_v2  ;;  %vm576_vm2 = vweird.f32 %v567_v2  ;;  %v580_v8 = vand.u32 2147483647, %v567_v2 }
 0x2dc   :  { %840 = vrcp.f32 %v1051_v7  ;;  %v456_v31 = vor.u32 1.1754944e-38, %v455_v22  ;;  %vm454_vm14 = vcmp.eq.f32.partialorder %v453_v23, 8.507059e+37  ;;  %vm591_vm7 = vweird.f32 %v1051_v7 }
 0x2dd   :  { %v432_v5 = vmul.f32 %v835_v59, %v431_v1  ;;  %vm581_vm5 = vcmp.eq.f32.partialorder %v580_v8, 8.507059e+37 }
 0x2df   :  { %v433_v9 = vadd.f32 %v835_v59, %v432_v5 }
 0x2e0   :  { %v837_v4 = vpop.eup %836 }
 0x2e1   :  { %v445_v6 = vmul.f32 %v837_v4, %v428_v63  ;;  %v839_v10 = vpop.eup %838  ;;  %v437_v14 = vsel %vm436_vm9, %v835_v59, %v433_v9  ;;  %vm450_vm11 = vweird.f32 %v837_v4  ;;  %vm596_vm9 = vcmp.eq.f32.partialorder %v595_v48, 8.507059e+37 }
 0x2e2   :  { %v572_v16 = vmul.f32 %v839_v10, %v567_v2  ;;  %v442_v18 = vsel %vm439_vm10, %v441_v17, %v437_v14  ;;  %v841_v21 = vpop.eup %840  ;;  %vm451_vm13 = vmor %vm449_vm12, %vm450_vm11  ;;  %vm577_vm15 = vweird.f32 %v839_v10  ;;  %vm674_vm10 = vcmask 195584  }
 0x2e3   :  { %v446_v39 = vsub.f32 1.0, %v445_v6  ;;  %v443_v13 = vmul.f32 %v1023_v56, %v442_v18  ;;  %v587_v27 = vmul.f32 %v841_v21, %v1051_v7  ;;  %v582_v56 = vand.u32 2147483648, %v567_v2  ;;  %vm578_vm4 = vmor %vm576_vm2, %vm577_vm15 }
 0x2e4   :  { %v573_v20 = vsub.f32 1.0, %v572_v16  ;;  %vm592_vm6 = vweird.f32 %v841_v21  ;;  %v775_v16 = vld [vmem:[%s1089_s2] sm:$0xff] }
 0x2e5   :  { %v447_v15 = vmul.f32 %v837_v4, %v446_v39  ;;  %v459_v32 = vpack.c.bf16 %v443_v13, %v443_v13  ;;  %v588_v34 = vsub.f32 1.0, %v587_v27  ;;  %v583_v42 = vor.u32 1.1754944e-38, %v582_v56  ;;  %vm593_vm8 = vmor %vm591_vm7, %vm592_vm6 }
 0x2e6   :  { %v574_v29 = vmul.f32 %v839_v10, %v573_v20 }
 0x2e7   :  { %v448_v19 = vadd.f32 %v837_v4, %v447_v15  ;;  %v589_v26 = vmul.f32 %v841_v21, %v588_v34  ;;  %v776_v15 = vld [vmem:[%s1089_s2 + $0x8] sm:$0xff] }
 0x2e8   :  { %v575_v35 = vadd.f32 %v839_v10, %v574_v29  ;;  %706 = vmatpush.bf16.msra.mxu0 %v776_v15 }
 0x2e9   :  { %v452_v28 = vsel %vm451_vm13, %v837_v4, %v448_v19  ;;  %v590_v47 = vadd.f32 %v841_v21, %v589_v26 }
 0x2ea   :  { %v457_v33 = vsel %vm454_vm14, %v456_v31, %v452_v28  ;;  %v579_v41 = vsel %vm578_vm4, %v839_v10, %v575_v35 }
 0x2eb   :  { %v458_v37 = vmul.f32 %v1027_v61, %v457_v33  ;;  %v584_v46 = vsel %vm581_vm5, %v583_v42, %v579_v41  ;;  %v597_v61 = vand.u32 2147483648, %v1051_v7  ;;  %v594_v51 = vsel %vm593_vm8, %v841_v21, %v590_v47 }
 0x2ec   :  { %v625_v38 = vpop.permute.xlu0 %624  ;;  %v585_v49 = vmul.f32 %v1030_v62, %v584_v46  ;;  %707 = vmatpush.bf16.msra.mxu0 %v775_v16 }
 0x2ed   :  { %v630_v43 = vsel %vm181_vm3, %v625_v38, 0  ;;  %v460_v44 = vpack.c.bf16 %v458_v37, %v458_v37  ;;  %v598_v53 = vor.u32 1.1754944e-38, %v597_v61 }
 0x2ee   :  { %v601_v54 = vpack.c.bf16 %v585_v49, %v585_v49 }
 0x2ef   :  { %v599_v55 = vsel %vm596_vm9, %v598_v53, %v594_v51 }
 0x2f0   :  { %v600_v57 = vmul.f32 %v1016_v45, %v599_v55 }
 0x2f1   :  { %v462_v24 = vpop.permute.xlu1 %461 }
 0x2f2   :  { %v467_v30 = vsel %vm181_vm3, %v462_v24, 0  ;;  %v602_v58 = vpack.c.bf16 %v600_v57, %v600_v57 }
 0x2f3   :  { %476 = vmatpush.bf16.msra.mxu2 %v467_v30 }
 0x2f6   :  { %757 = vmatmul.msk.bf16.vlgmr.msra.gmra.mxu2 %vm76_vm1, %v459_v32 }
 0x2f9   :  { %v483_v40 = vpop.permute.xlu1 %482 }
 0x2fa   :  { %v488_v25 = vsel %vm181_vm3, %v483_v40, 0 }
 0x2fb   :  { %497 = vmatpush.bf16.msrb.mxu3 %v488_v25 }
 0x2fe   :  { %758 = vmatmul.msk.bf16.vlgmr.msrb.gmra.mxu3 %vm76_vm1, %v460_v44 }
 0x2ff   :  { %639 = vmatpush.bf16.msra.mxu3 %v630_v43 }
 0x301   :  { %v604_v50 = vpop.permute.xlu1 %603 }
 0x302   :  { %v609_v52 = vsel %vm181_vm3, %v604_v50, 0  ;;  %vm671_vm3 = vcmask 130048  }
 0x303   :  { %618 = vmatpush.bf16.msrb.mxu2 %v609_v52 }
 0x306   :  { %761 = vmatmul.msk.bf16.vlgmr.msrb.gmra.mxu2 %vm76_vm1, %v601_v54 }
 0x30e   :  { %762 = vmatmul.msk.bf16.vlgmr.msra.gmra.mxu3 %vm76_vm1, %v602_v58 }
 0x318   :  { %v336_v36 = vpop.f32.mrf.mxu2 }
 0x319   :  { %v194_v60 = vpop.f32.mrf.mxu3 }
 0x320   :  { %v338_v59 = vpop.f32.mrf.mxu2 }
 0x321   :  { %v196_v62 = vpop.f32.mrf.mxu3 }
 0x329   :  { %v215_v63 = vpop.f32.mrf.mxu3 }
 0x331   :  { %v217_v0 = vpop.f32.mrf.mxu3 }
 0x339   :  { %v357_v1 = vpop.f32.mrf.mxu3 }
 0x33a   :  { %v794_v2 = vpack.i.bf16 %v357_v1, %v336_v36 }
 0x33c   :  { %795 = vrot.lane.b32.xlu2 %v794_v2, %s879_s5 }
 0x341   :  { %v359_v4 = vpop.f32.mrf.mxu3 }
 0x379   :  { %v478_v5 = vpop.f32.mrf.mxu2 }
 0x381   :  { %v480_v6 = vpop.f32.mrf.mxu2  ;;  %v499_v7 = vpop.f32.mrf.mxu3 }
 0x382   :  { %v799_v9 = vpack.i.bf16 %v499_v7, %v478_v5 }
 0x384   :  { %800 = vrot.lane.b32.xlu1 %v799_v9, %s880_s6 }
 0x389   :  { %v501_v45 = vpop.f32.mrf.mxu3  ;;  %v620_v39 = vpop.f32.mrf.mxu2 }
 0x391   :  { %v622_v10 = vpop.f32.mrf.mxu2  ;;  %v641_v11 = vpop.f32.mrf.mxu3 }
 0x392   :  { %v804_v12 = vpack.i.bf16 %v641_v11, %v620_v39 }
 0x394   :  { %805 = vrot.lane.b32.xlu1 %v804_v12, %s881_s7 }
 0x396   :  { %v796_v18 = vpop.permute.xlu2 %795 }
 0x397   :  { %v798_v19 = vunpack.i.h.bf16 %v796_v18  ;;  %v797_v20 = vunpack.i.l.bf16 %v796_v18 }
 0x399   :  { %v643_v14 = vpop.f32.mrf.mxu3  ;;  %v669_v23 = vsel %vm76_vm1, %v194_v60, %v797_v20 }
 0x39c   :  { %694 = vrot.lane.b32.xlu1 %v923_v3, %s882_s8  ;;  %v670_v3 = vsel %vm76_vm1, %v215_v63, %v798_v19 }
 0x3f6   :  { %v801_v17 = vpop.permute.xlu1 %800 }
 0x3f7   :  { %v803_v21 = vunpack.i.h.bf16 %v801_v17  ;;  %v802_v22 = vunpack.i.l.bf16 %v801_v17 }
 0x3f9   :  { %v673_v28 = vsel %vm671_vm3, %v670_v3, %v803_v21  ;;  %v672_v29 = vsel %vm671_vm3, %v669_v23, %v802_v22 }
 0x406   :  { %v806_v13 = vpop.permute.xlu1 %805 }
 0x407   :  { %v808_v24 = vunpack.i.h.bf16 %v806_v13  ;;  %v807_v27 = vunpack.i.l.bf16 %v806_v13 }
 0x409   :  { %v676_v30 = vsel %vm674_vm10, %v673_v28, %v808_v24  ;;  %v675_v31 = vsel %vm674_vm10, %v672_v29, %v807_v27 }
 0x40a   :  { %v677_v32 = vpack.c.bf16 %v676_v30, %v675_v31 }
 0x40c   :  { %771 = vmatmul.msk.bf16.vlgmr.msra.gmra.mxu0 %vm46_vm0, %v677_v32 }
 0x40e   :  { %v695_v33 = vpop.permute.xlu1 %694 }
 0x489   :  { %v709_v34 = vpop.f32.mrf.mxu0 }
 0x48a   :  { %v710_v35 = vadd.f32 %v709_v34, %v695_v33 }
 0x48c   :  { %714 = vst.msk [vmem:[#allocation2] sm:$0xff] %vm46_vm0, %v710_v35 }
 0x491   :  { %v711_v56 = vpop.f32.mrf.mxu0 }
 0x492   :  { %v712_v37 = vadd.f32 %v711_v56, %v695_v33 }
 0x494   :  { %715 = vst.msk [vmem:[#allocation2 + $0x8] sm:$0xff] %vm46_vm0, %v712_v37 }
 0x495   :  { %728 = dma.vmem_to_hbm [thread:$0]  %s721_s16, 256, %s723_s14, [#allocation3], %s884_s17, %s884_s17, %s879_s5  }
 0x496   :  { %866 = dma.done.wait [#allocation3], 256  }
 0x497   :  { %867 = vsyncadd [#allocation3], 4294967040 }
 0x498   :  { %733 = vsyncpa [#allocation3], 1 }

</bundles_post_ra>
